<compile_context>
chip_gen: v7x
topology: tpu7x:2x2x1
jax: 0.10.0
libtpu: 0.0.40
codegen_flags: <defaults>
</compile_context>

<pallas_src>
import math

import jax
import jax.numpy as jnp
from jax.experimental import pallas as pl
from jax.experimental.pallas import tpu as pltpu


def _round_up(x, m):
    return ((x + m - 1) // m) * m


def _cr_kernel(x_ref, w1_ref, w2_ref, b2_ref, w3_ref, b3_ref, o_ref):
    # x_ref : (16, TB)  bf16  rows 0..3 = features, row 4 = 1.0 (bias), rest 0
    # w1_ref: (128, 16) bf16  fc1 weight^T, b1 folded into column 4
    # w2_ref: (128,128) bf16  fc2 weight^T
    # b2_ref: (128, 1)  f32
    # w3_ref: (128, 1)  f32   fc3 weight as a column
    # b3_ref: (1, 1)    f32
    # o_ref : (1, TB)   f32   lane-dense output block

    # ---- fc1 + relu: MXU matmul (bias folded in via the ones row), f32 acc.
    h1 = jnp.dot(w1_ref[...], x_ref[...],
                 preferred_element_type=jnp.float32)        # (128, TB)
    h1 = jnp.maximum(h1, 0.0)

    # ---- fc2 + tanh: MXU bf16 matmul with f32 accumulation.
    h2 = jnp.dot(w2_ref[...], h1.astype(jnp.bfloat16),
                 preferred_element_type=jnp.float32)        # (128, TB)
    h2 = jnp.tanh(h2 + b2_ref[...])                         # f32 EUP (v5e-safe)

    # ---- fc3 (N=1): VPU multiply + XLU cross-sublane reduction, f32 acc.
    out = jnp.sum(h2 * w3_ref[...], axis=0, keepdims=True) + b3_ref[...]  # (1, TB)
    o_ref[...] = out.astype(o_ref.dtype)


def cr_forward(x, params, *, tb=2048):
    """x: (B, 4) float32 -> (B, 1) float32."""
    w1, b1, w2, b2, w3, b3 = params
    B = x.shape[0]

    # Batch lives in the lane dim -> tile must be a multiple of 128.
    TB = _round_up(max(tb, 128), 128)
    if B > 128:
        # Keep >= 2 tiles when the batch allows it so v7x's 2 TensorCores
        # both get work under dimension_semantics=("parallel",).
        TB = min(TB, _round_up(pl.cdiv(B, 2), 128))
    TB = min(TB, _round_up(B, 128))
    B_pad = _round_up(B, TB)
    n_tiles = B_pad // TB

    # ---- one-off packing outside the kernel (tiny XLA ops) -----------------
    # x -> (16, B_pad) bf16 feature-major; row 4 = 1.0 carries fc1's bias.
    x_t = jnp.zeros((16, B_pad), jnp.float32)
    x_t = x_t.at[0:4, :B].set(x.astype(jnp.float32).T)
    x_t = x_t.at[4, :].set(1.0)
    x_t = x_t.astype(jnp.bfloat16)

    # fc1 weight^T padded to (128, 16) with the bias folded into column 4.
    w1t = jnp.zeros((128, 16), jnp.float32)
    w1t = w1t.at[:, 0:4].set(w1.T)
    w1t = w1t.at[:, 4].set(b1.reshape(128))
    w1t = w1t.astype(jnp.bfloat16)

    w2t = w2.T.astype(jnp.bfloat16)                 # (128, 128)
    b2c = b2.reshape(128, 1).astype(jnp.float32)    # (128, 1)
    w3c = w3.reshape(128, 1).astype(jnp.float32)    # (128, 1)
    b3c = b3.reshape(1, 1).astype(jnp.float32)      # (1, 1)

    resident = lambda shape: pl.BlockSpec(shape, lambda i, _s=shape: (0,) * len(_s))

    out = pl.pallas_call(
        _cr_kernel,
        out_shape=jax.ShapeDtypeStruct((1, B_pad), jnp.float32),
        grid_spec=pltpu.PrefetchScalarGridSpec(
            num_scalar_prefetch=0,
            grid=(n_tiles,),
            in_specs=[
                pl.BlockSpec((16, TB), lambda i: (0, i)),   # x (batch tiled, lane-dense)
                resident((128, 16)),                        # w1^T (+ folded b1), bf16
                resident((128, 128)),                       # w2^T, bf16
                resident((128, 1)),                         # b2 column
                resident((128, 1)),                         # w3 column
                resident((1, 1)),                           # b3
            ],
            out_specs=pl.BlockSpec((1, TB), lambda i: (0, i)),
        ),
        compiler_params=pltpu.CompilerParams(
            dimension_semantics=("parallel",)),             # megacore split on v7x
    )(x_t, w1t, w2t, b2c, w3c, b3c)

    # (1, B_pad) -> (B, 1): row-major reshape is a free view; slice off padding.
    return out.reshape(B_pad, 1)[:B]


# ----------------------------- init / reference ------------------------------

def _xavier_uniform(key, fan_in, fan_out, shape):
    # nn.init.xavier_uniform_ (gain=1): U(-a, a), a = sqrt(6/(fan_in+fan_out))
    a = math.sqrt(6.0 / (fan_in + fan_out))
    return jax.random.uniform(key, shape, jnp.float32, -a, a)


def _linear_bias(key, fan_in, shape):
    # PyTorch default Linear bias init: U(-1/sqrt(fan_in), 1/sqrt(fan_in))
    bound = 1.0 / math.sqrt(fan_in)
    return jax.random.uniform(key, shape, jnp.float32, -bound, bound)


def init_params(key):
    k = jax.random.split(key, 6)
    w1 = _xavier_uniform(k[0], 4, 128, (4, 128))      # (in, out)
    b1 = _linear_bias(k[1], 4, (1, 128))
    w2 = _xavier_uniform(k[2], 128, 128, (128, 128))  # (in, out)
    b2 = _linear_bias(k[3], 128, (1, 128))
    w3 = _xavier_uniform(k[4], 128, 1, (1, 128))      # fc3 weight kept as a row
    b3 = _linear_bias(k[5], 128, (1, 1))
    return (w1, b1, w2, b2, w3, b3)


def cr_reference(x, params):
    w1, b1, w2, b2, w3, b3 = params
    h = jnp.maximum(x @ w1 + b1, 0.0)
    h = jnp.tanh(h @ w2 + b2)
    return h @ w3.T + b3


if __name__ == "__main__":
    key = jax.random.PRNGKey(0)
    pkey, xkey1, xkey2 = jax.random.split(key, 3)
    params = init_params(pkey)

    # Small Pendulum-style critic batch (state dim 4).
    B = 8
    x = jax.random.normal(xkey1, (B, 4), jnp.float32)
    out = jax.block_until_ready(cr_forward(x, params))
    ref = cr_reference(x, params)
    assert out.shape == (B, 1)
    # bf16 inputs on the fc1/fc2 MXU matmuls (f32 accumulate) -> relaxed tol.
    assert jnp.allclose(out, ref, atol=2e-2, rtol=2e-2), (out, ref)

    # Exercise the multi-tile grid + batch padding path (non-multiple batch).
    B2 = 300
    x2 = jax.random.normal(xkey2, (B2, 4), jnp.float32)
    out2 = jax.block_until_ready(cr_forward(x2, params))
    ref2 = cr_reference(x2, params)
    assert out2.shape == (B2, 1)
    assert jnp.allclose(out2, ref2, atol=2e-2, rtol=2e-2), (out2, ref2)

    print("KERNEL_OK")
</pallas_src>

<mosaic_0001>
module attributes {stable_mosaic.version = 11 : i64} {
  func.func @_cr_kernel(%arg0: i32, %arg1: memref<16x128xbf16, #tpu.memory_space<vmem>>, %arg2: memref<128x16xbf16, #tpu.memory_space<vmem>>, %arg3: memref<128x128xbf16, #tpu.memory_space<vmem>>, %arg4: memref<128x1xf32, #tpu.memory_space<vmem>>, %arg5: memref<128x1xf32, #tpu.memory_space<vmem>>, %arg6: memref<1x1xf32, #tpu.memory_space<vmem>>, %arg7: memref<1x128xf32, #tpu.memory_space<vmem>>) attributes {dimension_semantics = [#tpu.dimension_semantics<parallel>], iteration_bounds = array<i64: 1>, scalar_prefetch = 0 : i64, scratch_operands = 0 : i64, tpu.core_type = #tpu.core_type<tc>, window_params = [{transform_indices = @transform_0, window_bounds = array<i64: 16, 128>}, {pipeline_mode = #tpu.pipeline_mode<synchronous>, transform_indices = @transform_1, window_bounds = array<i64: 128, 16>}, {pipeline_mode = #tpu.pipeline_mode<synchronous>, transform_indices = @transform_2, window_bounds = array<i64: 128, 128>}, {pipeline_mode = #tpu.pipeline_mode<synchronous>, transform_indices = @transform_3, window_bounds = array<i64: 128, 1>}, {pipeline_mode = #tpu.pipeline_mode<synchronous>, transform_indices = @transform_4, window_bounds = array<i64: 128, 1>}, {pipeline_mode = #tpu.pipeline_mode<synchronous>, transform_indices = @transform_5, window_bounds = array<i64: 1, 1>}, {transform_indices = @transform_6, window_bounds = array<i64: 1, 128>}]} {
    %c0 = arith.constant 0 : index
    %c0_0 = arith.constant 0 : index
    %0 = vector.load %arg2[%c0, %c0_0] : memref<128x16xbf16, #tpu.memory_space<vmem>>, vector<128x16xbf16>
    %c0_1 = arith.constant 0 : index
    %c0_2 = arith.constant 0 : index
    %1 = vector.load %arg1[%c0_1, %c0_2] : memref<16x128xbf16, #tpu.memory_space<vmem>>, vector<16x128xbf16>
    %cst = arith.constant dense<0.000000e+00> : vector<128x128xf32>
    %2 = tpu.matmul %0, %1, %cst {dimension_numbers = #tpu.dot_dimension_numbers<[1], [0], [0], [1], [0, 0, 1, 1], [], []>} : vector<128x16xbf16>, vector<16x128xbf16>, vector<128x128xf32> -> vector<128x128xf32>
    %cst_3 = arith.constant 0.000000e+00 : f32
    %3 = vector.broadcast %cst_3 : f32 to vector<128x128xf32>
    %4 = arith.maximumf %2, %3 : vector<128x128xf32>
    %c0_4 = arith.constant 0 : index
    %c0_5 = arith.constant 0 : index
    %5 = vector.load %arg3[%c0_4, %c0_5] : memref<128x128xbf16, #tpu.memory_space<vmem>>, vector<128x128xbf16>
    %6 = arith.truncf %4 : vector<128x128xf32> to vector<128x128xbf16>
    %cst_6 = arith.constant dense<0.000000e+00> : vector<128x128xf32>
    %7 = tpu.matmul %5, %6, %cst_6 {dimension_numbers = #tpu.dot_dimension_numbers<[1], [0], [0], [1], [0, 0, 1, 1], [], []>} : vector<128x128xbf16>, vector<128x128xbf16>, vector<128x128xf32> -> vector<128x128xf32>
    %c0_7 = arith.constant 0 : index
    %c0_8 = arith.constant 0 : index
    %8 = vector.load %arg4[%c0_7, %c0_8] : memref<128x1xf32, #tpu.memory_space<vmem>>, vector<128x1xf32>
    %9 = vector.broadcast %8 : vector<128x1xf32> to vector<128x128xf32>
    %10 = arith.addf %7, %9 : vector<128x128xf32>
    %11 = math.tanh %10 : vector<128x128xf32>
    %c0_9 = arith.constant 0 : index
    %c0_10 = arith.constant 0 : index
    %12 = vector.load %arg5[%c0_9, %c0_10] : memref<128x1xf32, #tpu.memory_space<vmem>>, vector<128x1xf32>
    %13 = vector.broadcast %12 : vector<128x1xf32> to vector<128x128xf32>
    %14 = arith.mulf %11, %13 : vector<128x128xf32>
    %cst_11 = arith.constant dense<0.000000e+00> : vector<128xf32>
    %15 = vector.multi_reduction <add>, %14, %cst_11 [0] : vector<128x128xf32> to vector<128xf32>
    %16 = vector.shape_cast %15 : vector<128xf32> to vector<1x128xf32>
    %c0_12 = arith.constant 0 : index
    %c0_13 = arith.constant 0 : index
    %17 = vector.load %arg6[%c0_12, %c0_13] : memref<1x1xf32, #tpu.memory_space<vmem>>, vector<1x1xf32>
    %18 = vector.broadcast %17 : vector<1x1xf32> to vector<1x128xf32>
    %19 = arith.addf %16, %18 : vector<1x128xf32>
    %c0_14 = arith.constant 0 : index
    %c0_15 = arith.constant 0 : index
    %20 = vector.load %arg7[%c0_14, %c0_15] : memref<1x128xf32, #tpu.memory_space<vmem>>, vector<1x128xf32>
    tpu.vector_store %arg7[%c0_14, %c0_15], %19 {strides = array<i32>} : memref<1x128xf32, #tpu.memory_space<vmem>>, vector<1x128xf32>,
    return
  }
  func.func @transform_0(%arg0: i32) -> (i32, i32) {
    %c0_i32 = arith.constant 0 : i32
    %c0_i32_0 = arith.constant 0 : i32
    return %c0_i32, %arg0 : i32, i32
  }
  func.func @transform_1(%arg0: i32) -> (i32, i32) {
    %c0_i32 = arith.constant 0 : i32
    %c0_i32_0 = arith.constant 0 : i32
    %c0_i32_1 = arith.constant 0 : i32
    return %c0_i32, %c0_i32_0 : i32, i32
  }
  func.func @transform_2(%arg0: i32) -> (i32, i32) {
    %c0_i32 = arith.constant 0 : i32
    %c0_i32_0 = arith.constant 0 : i32
    %c0_i32_1 = arith.constant 0 : i32
    return %c0_i32, %c0_i32_0 : i32, i32
  }
  func.func @transform_3(%arg0: i32) -> (i32, i32) {
    %c0_i32 = arith.constant 0 : i32
    %c0_i32_0 = arith.constant 0 : i32
    %c0_i32_1 = arith.constant 0 : i32
    return %c0_i32, %c0_i32_0 : i32, i32
  }
  func.func @transform_4(%arg0: i32) -> (i32, i32) {
    %c0_i32 = arith.constant 0 : i32
    %c0_i32_0 = arith.constant 0 : i32
    %c0_i32_1 = arith.constant 0 : i32
    return %c0_i32, %c0_i32_0 : i32, i32
  }
  func.func @transform_5(%arg0: i32) -> (i32, i32) {
    %c0_i32 = arith.constant 0 : i32
    %c0_i32_0 = arith.constant 0 : i32
    %c0_i32_1 = arith.constant 0 : i32
    return %c0_i32, %c0_i32_0 : i32, i32
  }
  func.func @transform_6(%arg0: i32) -> (i32, i32) {
    %c0_i32 = arith.constant 0 : i32
    %c0_i32_0 = arith.constant 0 : i32
    return %c0_i32, %arg0 : i32, i32
  }
}

</mosaic_0001>

<bundles_post_ra>
// kernel: tpu_custom_call.1
= control target key start
LH: loop header
LB: loop body
LE: loop exit
PB: predicated region body
PF: predicated region fallthrough
CT: control target
= control target key end

     0   :  { %s1069_s0 = inlined_call_operand.vmem [shape: bf16[16,128], index: 0, kind: input, shape index: {}]   ;;  %s1070_s1 = inlined_call_operand.vmem [shape: bf16[128,16], index: 1, kind: input, shape index: {}]   ;;  %s1071_s2 = inlined_call_operand.vmem [shape: bf16[128,128], index: 2, kind: input, shape index: {}]   ;;  %s1072_s3 = inlined_call_operand.vmem [shape: f32[128,1], index: 3, kind: input, shape index: {}]   ;;  %s1073_s4 = inlined_call_operand.vmem [shape: f32[128,1], index: 4, kind: input, shape index: {}]   ;;  %s1074_s5 = inlined_call_operand.<no memory space> [shape: f32[1,1], index: 5, kind: input, shape index: {}]   ;;  %s1075_s6 = inlined_call_operand.hbm [shape: f32[1,128], index: 6, kind: output, shape index: {}]  }
   0x1   :  { %v11_v0 = vstv %s1074_s5 }
   0x2   :  { %12 = vst [vmem:[#allocation2] sm:$0x1] %v11_v0 }
   0x3   :  { %v789_v1 = vld [vmem:[%s1069_s0] sm:$0xff]   ;;  %vm91_vm0 = vcmask 130048   ;;  %v791_v3 = vld [vmem:[%s1070_s1 + $0x8] sm:$0xff]   ;;  %v792_v4 = vld [vmem:[%s1070_s1 + $0x10] sm:$0xff]  }
   0x4   :  { %v790_v2 = vld [vmem:[%s1070_s1] sm:$0xff]   ;;  %719 = vmatprep.subr.bf16.mxu0 %v789_v1  ;;  %v793_v5 = vld [vmem:[%s1070_s1 + $0x18] sm:$0xff]  }
   0x5   :  { %720 = vmatpush3.bf16.msra.mxu0 %v789_v1  ;;  %721 = vmatprep.mubr.msk.bf16.mxu0 %vm91_vm0, %v790_v2  ;;  %v794_v6 = vld [vmem:[%s1070_s1 + $0x20] sm:$0xff]  }
   0x8   :  { %722 = vmatmul.mubr.msk.bf16.vlgmr.msra.gmra.mrb[0].mxu0 %vm91_vm0, %v791_v3 }
   0x9   :  { %725 = vmatprep.mubr.msk.bf16.mxu0 %vm91_vm0, %v792_v4 }
  0x10   :  { %726 = vmatmul.mubr.msk.bf16.gmra.mrb[4].mxu0 %vm91_vm0, %v793_v5 }
  0x11   :  { %13 = vsyncpa [#allocation4], 0  ;;  %729 = vmatprep.mubr.msk.bf16.mxu0 %vm91_vm0, %v794_v6  ;;  %v795_v7 = vld [vmem:[%s1070_s1 + $0x28] sm:$0xff]   ;;  %v796_v8 = vld [vmem:[%s1070_s1 + $0x30] sm:$0xff]   ;;  %v862_v13 = vmov 0  }
  0x12   :  { %v797_v9 = vld [vmem:[%s1070_s1 + $0x38] sm:$0xff]   ;;  %v798_v10 = vld [vmem:[%s1071_s2] sm:$0xff]   ;;  %v799_v11 = vld [vmem:[%s1071_s2 + $0x10] sm:$0xff]   ;;  %787 = vset.pattern.permute.xlu0 %v862_v13  ;;  %788 = vset.pattern.permute.xlu1 %v862_v13 }
  0x13   :  { %757 = vmatprep.mubr.bf16.mxu1 %v799_v11  ;;  %v253_v12 = vld [vmem:[%s1072_s3] sm:$0xff]  ;;  %v254_v14 = vld [vmem:[%s1072_s3 + $0x8] sm:$0xff]  ;;  %v255_v15 = vld [vmem:[%s1072_s3 + $0x10] sm:$0xff] }
  0x14   :  { %271 = vperm.xlu0 %787, %v253_v12   ;;  %281 = vperm.xlu1 %788, %v255_v15   ;;  %v257_v16 = vld [vmem:[%s1072_s3 + $0x20] sm:$0xff]  ;;  %v256_v17 = vld [vmem:[%s1072_s3 + $0x18] sm:$0xff]  ;;  %v259_v18 = vld [vmem:[%s1072_s3 + $0x30] sm:$0xff] }
  0x15   :  { %v258_v19 = vld [vmem:[%s1072_s3 + $0x28] sm:$0xff]  ;;  %v510_v20 = vld [vmem:[%s1073_s4] sm:$0xff]  ;;  %v260_v21 = vld [vmem:[%s1072_s3 + $0x38] sm:$0xff] }
  0x16   :  { %v261_v22 = vld [vmem:[%s1072_s3 + $0x40] sm:$0xff]  ;;  %v511_v23 = vld [vmem:[%s1073_s4 + $0x8] sm:$0xff]  ;;  %v512_v25 = vld [vmem:[%s1073_s4 + $0x10] sm:$0xff] }
  0x17   :  { %v262_v24 = vld [vmem:[%s1072_s3 + $0x48] sm:$0xff]  ;;  %v263_v26 = vld [vmem:[%s1072_s3 + $0x50] sm:$0xff]  ;;  %v513_v27 = vld [vmem:[%s1073_s4 + $0x18] sm:$0xff] }
  0x18   :  { %730 = vmatmul.mubr.msk.bf16.gmra.mrb[8].mxu0 %vm91_vm0, %v795_v7  ;;  %276 = vperm.xlu0 %787, %v254_v14   ;;  %v264_v28 = vld [vmem:[%s1072_s3 + $0x58] sm:$0xff]  ;;  %v514_v29 = vld [vmem:[%s1073_s4 + $0x20] sm:$0xff]  ;;  %v515_v31 = vld [vmem:[%s1073_s4 + $0x28] sm:$0xff] }
  0x19   :  { %733 = vmatprep.mubr.msk.bf16.mxu0 %vm91_vm0, %v796_v8  ;;  %286 = vperm.xlu1 %788, %v256_v17   ;;  %v265_v30 = vld [vmem:[%s1072_s3 + $0x60] sm:$0xff]  ;;  %v266_v32 = vld [vmem:[%s1072_s3 + $0x68] sm:$0xff]  ;;  %v516_v33 = vld [vmem:[%s1073_s4 + $0x30] sm:$0xff] }
  0x1a   :  { %v267_v34 = vld [vmem:[%s1072_s3 + $0x70] sm:$0xff]  ;;  %v517_v35 = vld [vmem:[%s1073_s4 + $0x38] sm:$0xff]  ;;  %v518_v37 = vld [vmem:[%s1073_s4 + $0x40] sm:$0xff] }
  0x1b   :  { %v268_v36 = vld [vmem:[%s1072_s3 + $0x78] sm:$0xff]  ;;  %v520_v38 = vld [vmem:[%s1073_s4 + $0x50] sm:$0xff]  ;;  %v519_v39 = vld [vmem:[%s1073_s4 + $0x48] sm:$0xff] }
  0x1c   :  { %291 = vperm.xlu0 %787, %v257_v16   ;;  %v522_v40 = vld [vmem:[%s1073_s4 + $0x60] sm:$0xff]  ;;  %v521_v41 = vld [vmem:[%s1073_s4 + $0x58] sm:$0xff]  ;;  %v524_v42 = vld [vmem:[%s1073_s4 + $0x70] sm:$0xff] }
  0x1d   :  { %296 = vperm.xlu1 %788, %v258_v19   ;;  %v523_v43 = vld [vmem:[%s1073_s4 + $0x68] sm:$0xff]  ;;  %v643_v44 = vld [vmem:[#allocation2] sm:$0x1]  ;;  %v525_v45 = vld [vmem:[%s1073_s4 + $0x78] sm:$0xff] }
  0x20   :  { %734 = vmatmul.mubr.msk.bf16.gmra.mrb[12].mxu0 %vm91_vm0, %v797_v9  ;;  %301 = vperm.xlu0 %787, %v259_v18  }
  0x21   :  { %753 = vmatprep.mubr.bf16.mxu0 %v798_v10  ;;  %306 = vperm.xlu1 %788, %v260_v21  }
  0x24   :  { %528 = vperm.xlu0 %787, %v510_v20  }
  0x25   :  { %533 = vperm.xlu1 %788, %v511_v23   ;;  %v801_v23 = vld [vmem:[%s1071_s2 + $0x18] sm:$0xff]  }
  0x28   :  { %311 = vperm.xlu0 %787, %v261_v22   ;;  %v800_v22 = vld [vmem:[%s1071_s2 + $0x8] sm:$0xff]  }
  0x29   :  { %538 = vperm.xlu1 %788, %v512_v25   ;;  %v803_v25 = vld [vmem:[%s1071_s2 + $0x28] sm:$0xff]  }
  0x2c   :  { %316 = vperm.xlu0 %787, %v262_v24   ;;  %v802_v24 = vld [vmem:[%s1071_s2 + $0x20] sm:$0xff]  }
  0x2d   :  { %543 = vperm.xlu1 %788, %v513_v27   ;;  %v805_v27 = vld [vmem:[%s1071_s2 + $0x38] sm:$0xff]  }
  0x30   :  { %321 = vperm.xlu0 %787, %v263_v26   ;;  %v804_v26 = vld [vmem:[%s1071_s2 + $0x30] sm:$0xff]   ;;  %s863_s2 = smov [#allocation3]  }
  0x31   :  { %548 = vperm.xlu1 %788, %v514_v29   ;;  %s661_s12 = sshll.u32 %s863_s2, 4  ;;  %s662_s12 = int_to_ptr.vmem [resolvable:$true] %s661_s12 }
  0x32   :  { %s838_s13 = scalar_lea.vmem %s662_s12, 16  ;;  %s842_s14 = scalar_lea.vmem %s662_s12, 32 }
  0x33   :  { %p839_p0 = scmp.ne.s32.totalorder %s662_s12, %s838_s13  ;;  %p843_p1 = scmp.lt.s32.totalorder %s662_s12, %s662_s12 }
  0x34   :  { %326 = vperm.xlu0 %787, %v264_v28   ;;  %p844_p2 = scmp.lt.s32.totalorder %s842_s14, %s838_s13 }
  0x35   :  { %553 = vperm.xlu1 %788, %v515_v31  }
  0x36   :  { %p845_p3 = por %p844_p2, %p843_p1 }
  0x38   :  { %331 = vperm.xlu0 %787, %v265_v30   ;;  %p846_p4 = pnand %p845_p3, %p839_p0 }
  0x39   :  { %558 = vperm.xlu1 %788, %v516_v33  }
  0x3c   :  { %336 = vperm.xlu0 %787, %v266_v32  }
  0x3d   :  { %563 = vperm.xlu1 %788, %v517_v35  }
  0x40   :  { %341 = vperm.xlu0 %787, %v267_v34  }
  0x41   :  { %568 = vperm.xlu1 %788, %v518_v37  }
  0x44   :  { %346 = vperm.xlu0 %787, %v268_v36  }
  0x45   :  { %573 = vperm.xlu1 %788, %v519_v39  }
  0x48   :  { %578 = vperm.xlu0 %787, %v520_v38  }
  0x49   :  { %583 = vperm.xlu1 %788, %v521_v41  }
  0x4c   :  { %588 = vperm.xlu0 %787, %v522_v40  }
  0x4d   :  { %593 = vperm.xlu1 %788, %v523_v43  }
  0x50   :  { %598 = vperm.xlu0 %787, %v524_v42  }
  0x51   :  { %603 = vperm.xlu1 %788, %v525_v45  }
  0x54   :  { %646 = vperm.xlu0 %787, %v643_v44  }
  0x93   :  { %v272_v28 = vpop.permute.xlu0 %271  ;;  %v282_v30 = vpop.permute.xlu1 %281 }
  0x97   :  { %v277_v29 = vpop.permute.xlu0 %276 }
  0x98   :  { %v287_v32 = vpop.permute.xlu1 %286 }
  0x9b   :  { %v292_v31 = vpop.permute.xlu0 %291 }
  0x9c   :  { %v297_v34 = vpop.permute.xlu1 %296 }
  0x9f   :  { %v302_v33 = vpop.permute.xlu0 %301 }
  0xa0   :  { %v307_v36 = vpop.permute.xlu1 %306 }
  0xa3   :  { %v529_v35 = vpop.permute.xlu0 %528 }
  0xa4   :  { %v534_v38 = vpop.permute.xlu1 %533 }
  0xa7   :  { %v312_v37 = vpop.permute.xlu0 %311 }
  0xa8   :  { %v539_v40 = vpop.permute.xlu1 %538 }
  0xab   :  { %v317_v39 = vpop.permute.xlu0 %316 }
  0xac   :  { %v544_v42 = vpop.permute.xlu1 %543 }
  0xaf   :  { %v322_v41 = vpop.permute.xlu0 %321 }
  0xb0   :  { %v549_v44 = vpop.permute.xlu1 %548 }
  0xb3   :  { %v327_v43 = vpop.permute.xlu0 %326 }
  0xdb   :  { %v723_v46 = vpop.f32.mrb[0].mxu0 }
  0xdc   :  { %v150_v47 = vpop.f32.mrb[1].mxu0  ;;  %v215_v49 = vmax.f32 %v723_v46, 0.0 }
  0xdd   :  { %v724_v48 = vpop.f32.mrb[2].mxu0  ;;  %v213_v52 = vmax.f32 %v150_v47, 0.0 }
  0xde   :  { %v216_v50 = vmax.f32 %v724_v48, 0.0  ;;  %v153_v51 = vpop.f32.mrb[3].mxu0 }
  0xdf   :  { %v214_v53 = vmax.f32 %v153_v51, 0.0 }
  0xe0   :  { %v246_v54 = vpack.c.bf16 %v216_v50, %v215_v49 }
  0xe1   :  { %v245_v55 = vpack.c.bf16 %v214_v53, %v213_v52 }
  0xe3   :  { %v727_v56 = vpop.f32.mrb[4].mxu0  ;;  %737 = vmatprep.subr.bf16.mxu0 %v245_v55  ;;  %769 = vmatprep.subr.bf16.mxu1 %v245_v55 }
  0xe4   :  { %v166_v57 = vpop.f32.mrb[5].mxu0  ;;  %738 = vmatpush3.bf16.msra.mxu0 %v245_v55  ;;  %777 = vmatpush3.bf16.msra.mxu1 %v245_v55  ;;  %v219_v59 = vmax.f32 %v727_v56, 0.0  ;;  %v554_v55 = vpop.permute.xlu1 %553 }
  0xe5   :  { %v728_v58 = vpop.f32.mrb[6].mxu0  ;;  %739 = vmatprep.subr.bf16.mxu0 %v246_v54  ;;  %770 = vmatprep.subr.bf16.mxu1 %v246_v54  ;;  %v217_v62 = vmax.f32 %v166_v57, 0.0 }
  0xe6   :  { %v220_v60 = vmax.f32 %v728_v58, 0.0  ;;  %v169_v61 = vpop.f32.mrb[7].mxu0 }
  0xe7   :  { %v218_v63 = vmax.f32 %v169_v61, 0.0 }
  0xe8   :  { %v248_v0 = vpack.c.bf16 %v220_v60, %v219_v59  ;;  %740 = vmatpush3.bf16.msra.mxu0 %v246_v54  ;;  %778 = vmatpush3.bf16.msra.mxu1 %v246_v54  ;;  %v332_v59 = vpop.permute.xlu0 %331 }
  0xe9   :  { %v247_v1 = vpack.c.bf16 %v218_v63, %v217_v62  ;;  %v559_v63 = vpop.permute.xlu1 %558 }
  0xeb   :  { %v731_v2 = vpop.f32.mrb[8].mxu0  ;;  %741 = vmatprep.subr.bf16.mxu0 %v247_v1  ;;  %771 = vmatprep.subr.bf16.mxu1 %v247_v1 }
  0xec   :  { %v182_v3 = vpop.f32.mrb[9].mxu0  ;;  %742 = vmatpush3.bf16.msra.mxu0 %v247_v1  ;;  %779 = vmatpush3.bf16.msra.mxu1 %v247_v1  ;;  %v223_v5 = vmax.f32 %v731_v2, 0.0 }
  0xed   :  { %v732_v4 = vpop.f32.mrb[10].mxu0  ;;  %743 = vmatprep.subr.bf16.mxu0 %v248_v0  ;;  %772 = vmatprep.subr.bf16.mxu1 %v248_v0  ;;  %v221_v8 = vmax.f32 %v182_v3, 0.0  ;;  %v337_v3 = vpop.permute.xlu0 %336 }
  0xee   :  { %v224_v6 = vmax.f32 %v732_v4, 0.0  ;;  %v185_v7 = vpop.f32.mrb[11].mxu0 }
  0xef   :  { %v222_v9 = vmax.f32 %v185_v7, 0.0  ;;  %v564_v7 = vpop.permute.xlu1 %563 }
  0xf0   :  { %v250_v10 = vpack.c.bf16 %v224_v6, %v223_v5  ;;  %744 = vmatpush3.bf16.msra.mxu0 %v248_v0  ;;  %780 = vmatpush3.bf16.msra.mxu1 %v248_v0 }
  0xf1   :  { %v249_v11 = vpack.c.bf16 %v222_v9, %v221_v8 }
  0xf3   :  { %v735_v12 = vpop.f32.mrb[12].mxu0  ;;  %745 = vmatprep.subr.bf16.mxu0 %v249_v11  ;;  %773 = vmatprep.subr.bf16.mxu1 %v249_v11 }
  0xf4   :  { %v198_v13 = vpop.f32.mrb[13].mxu0  ;;  %746 = vmatpush3.bf16.msra.mxu0 %v249_v11  ;;  %781 = vmatpush3.bf16.msra.mxu1 %v249_v11  ;;  %v227_v15 = vmax.f32 %v735_v12, 0.0 }
  0xf5   :  { %v736_v14 = vpop.f32.mrb[14].mxu0  ;;  %747 = vmatprep.subr.bf16.mxu0 %v250_v10  ;;  %774 = vmatprep.subr.bf16.mxu1 %v250_v10  ;;  %v225_v18 = vmax.f32 %v198_v13, 0.0 }
  0xf6   :  { %v228_v16 = vmax.f32 %v736_v14, 0.0  ;;  %v201_v17 = vpop.f32.mrb[15].mxu0 }
  0xf7   :  { %v226_v19 = vmax.f32 %v201_v17, 0.0 }
  0xf8   :  { %v252_v20 = vpack.c.bf16 %v228_v16, %v227_v15  ;;  %748 = vmatpush3.bf16.msra.mxu0 %v250_v10  ;;  %782 = vmatpush3.bf16.msra.mxu1 %v250_v10 }
  0xf9   :  { %v251_v21 = vpack.c.bf16 %v226_v19, %v225_v18  ;;  %v342_v18 = vpop.permute.xlu0 %341 }
  0xfb   :  { %749 = vmatprep.subr.bf16.mxu0 %v251_v21  ;;  %775 = vmatprep.subr.bf16.mxu1 %v251_v21 }
  0xfc   :  { %750 = vmatpush3.bf16.msra.mxu0 %v251_v21  ;;  %783 = vmatpush3.bf16.msra.mxu1 %v251_v21 }
  0xfd   :  { %751 = vmatprep.subr.bf16.mxu0 %v252_v20  ;;  %776 = vmatprep.subr.bf16.mxu1 %v252_v20 }
 0x100   :  { %752 = vmatpush3.bf16.msra.mxu0 %v252_v20  ;;  %784 = vmatpush3.bf16.msra.mxu1 %v252_v20 }
 0x103   :  { %754 = vmatmul.mubr.bf16.vlgmr.msra.gmra.mrb[16].mxu0 %v800_v22  ;;  %758 = vmatmul.mubr.bf16.vlgmr.msra.gmra.mrb[0].mxu1 %v801_v23  ;;  %v569_v23 = vpop.permute.xlu1 %568 }
 0x104   :  { %761 = vmatprep.mubr.bf16.mxu1 %v802_v24 }
 0x10b   :  { %762 = vmatmul.mubr.bf16.gmra.mrb[4].mxu1 %v803_v25 }
 0x10c   :  { %765 = vmatprep.mubr.bf16.mxu1 %v804_v26 }
 0x113   :  { %766 = vmatmul.mubr.bf16.gmra.mrb[8].mxu1 %v805_v27 }
 0x1d6   :  { %v755_v45 = vpop.f32.mrb[16].mxu0  ;;  %v759_v46 = vpop.f32.mrb[0].mxu1 }
 0x1d7   :  { %v431_v47 = vpop.f32.mrb[17].mxu0  ;;  %v447_v48 = vpop.f32.mrb[1].mxu1  ;;  %v440_v54 = vadd.f32 %v755_v45, %v282_v30  ;;  %v456_v2 = vadd.f32 %v759_v46, %v302_v33 }
 0x1d8   :  { %v756_v49 = vpop.f32.mrb[18].mxu0  ;;  %v760_v50 = vpop.f32.mrb[2].mxu1  ;;  %v432_v51 = vadd.f32 %v431_v47, %v272_v28  ;;  %v448_v60 = vadd.f32 %v447_v48, %v292_v31 }
 0x1d9   :  { %v434_v52 = vpop.f32.mrb[19].mxu0  ;;  %v450_v53 = vpop.f32.mrb[3].mxu1  ;;  %v443_v57 = vadd.f32 %v756_v49, %v287_v32  ;;  %v459_v4 = vadd.f32 %v760_v50, %v307_v36 }
 0x1da   :  { %v435_v56 = vadd.f32 %v434_v52, %v277_v29  ;;  %806 = vtanh.f32 %v432_v51  ;;  %v451_v0 = vadd.f32 %v450_v53, %v297_v34  ;;  %v347_v32 = vpop.permute.xlu0 %346 }
 0x1db   :  { %808 = vtanh.f32 %v440_v54 }
 0x1dc   :  { %810 = vtanh.f32 %v435_v56 }
 0x1dd   :  { %812 = vtanh.f32 %v443_v57 }
 0x1de   :  { %v763_v58 = vpop.f32.mrb[4].mxu1  ;;  %814 = vtanh.f32 %v448_v60 }
 0x1df   :  { %v463_v61 = vpop.f32.mrb[5].mxu1  ;;  %816 = vtanh.f32 %v451_v0  ;;  %v472_v19 = vadd.f32 %v763_v58, %v322_v41 }
 0x1e0   :  { %v764_v62 = vpop.f32.mrb[6].mxu1  ;;  %818 = vtanh.f32 %v456_v2  ;;  %v464_v8 = vadd.f32 %v463_v61, %v312_v37  ;;  %v574_v37 = vpop.permute.xlu1 %573 }
 0x1e1   :  { %v466_v1 = vpop.f32.mrb[7].mxu1  ;;  %820 = vtanh.f32 %v459_v4  ;;  %v475_v24 = vadd.f32 %v764_v62, %v327_v43 }
 0x1e2   :  { %v467_v13 = vadd.f32 %v466_v1, %v317_v39  ;;  %822 = vtanh.f32 %v464_v8 }
 0x1e4   :  { %v807_v6 = vpop.eup %806  ;;  %824 = vtanh.f32 %v467_v13  ;;  %v584_v50 = vpop.permute.xlu1 %583 }
 0x1e5   :  { %v809_v10 = vpop.eup %808  ;;  %v606_v15 = vmul.f32 %v807_v6, %v529_v35  ;;  %826 = vtanh.f32 %v472_v19 }
 0x1e6   :  { %v767_v5 = vpop.f32.mrb[8].mxu1  ;;  %v811_v12 = vpop.eup %810  ;;  %v608_v20 = vmul.f32 %v809_v10, %v539_v40  ;;  %828 = vtanh.f32 %v475_v24  ;;  %v649_v10 = vlaneseq }
 0x1e7   :  { %v479_v9 = vpop.f32.mrb[9].mxu1  ;;  %v607_v16 = vmul.f32 %v811_v12, %v534_v38  ;;  %v813_v17 = vpop.eup %812  ;;  %v488_v38 = vadd.f32 %v767_v5, %v342_v18 }
 0x1e8   :  { %v768_v11 = vpop.f32.mrb[10].mxu1  ;;  %v815_v22 = vpop.eup %814  ;;  %v609_v25 = vmul.f32 %v813_v17, %v544_v42  ;;  %v480_v28 = vadd.f32 %v479_v9, %v332_v59  ;;  %v650_v13 = vshrl.u32 %v649_v10, 7 }
 0x1e9   :  { %v482_v14 = vpop.f32.mrb[11].mxu1  ;;  %v622_v21 = vadd.f32 %v607_v16, %v606_v15  ;;  %v817_v27 = vpop.eup %816  ;;  %v610_v29 = vmul.f32 %v815_v22, %v549_v44  ;;  %v491_v42 = vadd.f32 %v768_v11, %v347_v32 }
 0x1ea   :  { %v819_v31 = vpop.eup %818  ;;  %v483_v33 = vadd.f32 %v482_v14, %v337_v3  ;;  %v611_v34 = vmul.f32 %v817_v27, %v554_v55  ;;  %830 = vtanh.f32 %v480_v28  ;;  %v579_v44 = vpop.permute.xlu0 %578  ;;  %v651_v16 = vsub.s32 0, %v650_v13 }
 0x1eb   :  { %v623_v26 = vadd.f32 %v622_v21, %v608_v20  ;;  %v821_v36 = vpop.eup %820  ;;  %v612_v39 = vmul.f32 %v819_v31, %v559_v63  ;;  %v594_v61 = vpop.permute.xlu1 %593 }
 0x1ec   :  { %v823_v41 = vpop.eup %822  ;;  %832 = vtanh.f32 %v483_v33  ;;  %v613_v43 = vmul.f32 %v821_v36, %v564_v7 }
 0x1ed   :  { %v624_v30 = vadd.f32 %v623_v26, %v609_v25  ;;  %834 = vtanh.f32 %v488_v38  ;;  %v614_v47 = vmul.f32 %v823_v41, %v569_v23 }
 0x1ee   :  { %v825_v46 = vpop.eup %824  ;;  %836 = vtanh.f32 %v491_v42  ;;  %v589_v57 = vpop.permute.xlu0 %588 }
 0x1ef   :  { %v625_v35 = vadd.f32 %v624_v30, %v610_v29  ;;  %v827_v49 = vpop.eup %826  ;;  %v615_v52 = vmul.f32 %v825_v46, %v574_v37  ;;  %v604_v7 = vpop.permute.xlu1 %603 }
 0x1f0   :  { %v829_v53 = vpop.eup %828  ;;  %v616_v54 = vmul.f32 %v827_v49, %v579_v44 }
 0x1f1   :  { %v626_v40 = vadd.f32 %v625_v35, %v611_v34  ;;  %v617_v58 = vmul.f32 %v829_v53, %v584_v50 }
 0x1f2   :  { %v599_v4 = vpop.permute.xlu0 %598 }
 0x1f3   :  { %v627_v45 = vadd.f32 %v626_v40, %v612_v39 }
 0x1f4   :  { %v831_v56 = vpop.eup %830 }
 0x1f5   :  { %v628_v48 = vadd.f32 %v627_v45, %v613_v43  ;;  %v618_v62 = vmul.f32 %v831_v56, %v589_v57 }
 0x1f6   :  { %v833_v60 = vpop.eup %832  ;;  %v647_v18 = vpop.permute.xlu0 %646 }
 0x1f7   :  { %v629_v51 = vadd.f32 %v628_v48, %v614_v47  ;;  %v835_v0 = vpop.eup %834  ;;  %v619_v2 = vmul.f32 %v833_v60, %v594_v61  ;;  %v652_v20 = vrot.slane %v647_v18, %v651_v16 }
 0x1f8   :  { %v837_v3 = vpop.eup %836  ;;  %v620_v5 = vmul.f32 %v835_v0, %v599_v4 }
 0x1f9   :  { %v630_v55 = vadd.f32 %v629_v51, %v615_v52  ;;  %v621_v8 = vmul.f32 %v837_v3, %v604_v7 }
 0x1fb   :  { %v631_v59 = vadd.f32 %v630_v55, %v616_v54 }
 0x1fd   :  { %v632_v63 = vadd.f32 %v631_v59, %v617_v58 }
 0x1ff   :  { %v633_v1 = vadd.f32 %v632_v63, %v618_v62 }
 0x201   :  { %v634_v6 = vadd.f32 %v633_v1, %v619_v2 }
 0x203   :  { %v635_v9 = vadd.f32 %v634_v6, %v620_v5 }
 0x205   :  { %v636_v11 = vadd.f32 %v635_v9, %v621_v8 }
 0x207   :  { %v637_v12 = vrot.slane %v636_v11, 4 }
 0x209   :  { %v638_v14 = vadd.f32 %v637_v12, %v636_v11 }
 0x20b   :  { %v639_v15 = vrot.slane %v638_v14, 2 }
 0x20d   :  { %v640_v17 = vadd.f32 %v639_v15, %v638_v14 }
 0x20f   :  { %v641_v19 = vrot.slane %v640_v17, 1 }
 0x211   :  { %v642_v21 = vadd.f32 %v641_v19, %v640_v17 }
 0x213   :  { %v653_v22 = vadd.f32 %v652_v20, %v642_v21 }
 0x215   :  { %654 = vst [vmem:[#allocation3] sm:$0x1] %v653_v22 }
 0x216   :  { %849 = shalt.err (!%p846_p4)
}
 0x217   :  { %s850_s17 = scalar_lea.hbm %s1075_s6, 16 }
 0x218   :  { %p851_p5 = scmp.ne.s32.totalorder %s1075_s6, %s850_s17  ;;  %p854_p6 = scmp.lt.u32.totalorder %s850_s17, %s1075_s6 }
 0x21a   :  { %p856_p7 = pnand %p854_p6, %p851_p5 }
 0x21c   :  { %859 = shalt.err (!%p856_p7)
}
 0x21d   :  { %664 = dma.vmem_to_hbm [thread:$0]  %s662_s12, 16, %s1075_s6, [#allocation4]  }
 0x21e   :  { %860 = dma.done.wait [#allocation4], 16  }
 0x21f   :  { %861 = vsyncadd [#allocation4], 4294967280 }
 0x220   :  { %668 = vsyncpa [#allocation4], 1 }

</bundles_post_ra>
